<compile_context>
chip_gen: v6e
topology: v6e:2x2x1
jax: 0.10.0
libtpu: 0.0.40
codegen_flags: <defaults>
</compile_context>

<pallas_src>
import jax
import jax.numpy as jnp
from jax.experimental import pallas as pl
from jax.experimental.pallas import tpu as pltpu


def _h_swish_kernel(x_ref, o_ref):
    x = x_ref[...]
    # Literal hard-swish: relu6(x + 3) / 6 * x (weak-typed constants keep dtype).
    o_ref[...] = jnp.clip(x + 3.0, 0.0, 6.0) / 6.0 * x


def _h_swish_jnp(x):
    # Plain-JAX reference / tiny-tail fallback, same formula as the kernel.
    return jnp.clip(x + 3.0, 0.0, 6.0) / 6.0 * x


def _tpu_generation_params():
    """Returns (block_bytes, vmem_limit_bytes, tensorcores_per_chip)."""
    kind = ""
    try:
        kind = jax.devices()[0].device_kind.lower()
    except Exception:
        pass
    if "v7" in kind or "7x" in kind:
        # v7x: 64 MiB VMEM per TC, ~3.2 TB/s HBM, 2 TCs/chip.
        return 8 * 1024 * 1024, 48 * 1024 * 1024, 2
    if "v6" in kind or "v5" in kind:
        # v5e/v6e: 128 MiB VMEM, 1 TC/chip -> larger blocks are free.
        return 16 * 1024 * 1024, 80 * 1024 * 1024, 1
    # Unknown generation: conservative settings that fit every chip.
    return 8 * 1024 * 1024, 48 * 1024 * 1024, 1


def h_swish(x, *, block_bytes=None, vmem_limit_bytes=None):
    """Elementwise hard-swish on an arbitrarily shaped array (NCHW expected)."""
    orig_shape = x.shape
    dtype = x.dtype
    n = x.size
    if n == 0:
        return x

    gen_block, gen_vmem, n_tc = _tpu_generation_params()
    if block_bytes is None:
        block_bytes = gen_block
    if vmem_limit_bytes is None:
        vmem_limit_bytes = gen_vmem

    itemsize = jnp.dtype(dtype).itemsize
    # Sublane packing multiple: f32 -> 8, bf16 -> 16, int8/fp8 -> 32.
    sub = {4: 8, 2: 16, 1: 32}.get(itemsize, 8)
    lane = 128

    flat = jnp.ravel(x)
    rem = n % lane
    n_main = n - rem

    if n_main == 0:
        # <128 elements total: not worth a kernel launch.
        return _h_swish_jnp(flat).reshape(orig_shape)

    main = flat[:n_main] if rem else flat

    # Widest lane-dense last dim that divides the aligned length.
    width = lane
    for w in (2048, 1024, 512, 256):
        if n_main % w == 0:
            width = w
            break
    rows = n_main // width
    x2d = main.reshape(rows, width)

    # Rows per block so one block is ~block_bytes (in + out double-buffered
    # => ~4x block resident in VMEM, well under vmem_limit_bytes).
    target_rows = max(sub, (block_bytes // (width * itemsize)) // sub * sub)

    if rows <= target_rows:
        if n_tc > 1 and rows > n_tc * sub:
            # Whole tensor fits one block: split across the chip's TCs
            # (multi-TC parts only; on 1-TC chips splitting is pure overhead).
            part = pl.cdiv(rows, n_tc)
            tile_rows = ((part + sub - 1) // sub) * sub
        else:
            tile_rows = rows  # single full-array block (legal for any shape)
    else:
        tile_rows = target_rows

    num_blocks = pl.cdiv(rows, tile_rows)
    # Multi-TC grid hygiene: small grids should be a multiple of the TC count
    # so no TensorCore sits idle for an entire block.
    if n_tc > 1 and 1 < num_blocks < 8 and num_blocks % n_tc:
        num_blocks = ((num_blocks + n_tc - 1) // n_tc) * n_tc
        tile_rows = max(sub, ((pl.cdiv(rows, num_blocks) + sub - 1) // sub) * sub)
        num_blocks = pl.cdiv(rows, tile_rows)

    out2d = pl.pallas_call(
        _h_swish_kernel,
        out_shape=jax.ShapeDtypeStruct((rows, width), dtype),
        grid_spec=pltpu.PrefetchScalarGridSpec(
            num_scalar_prefetch=0,
            grid=(num_blocks,),
            in_specs=[pl.BlockSpec((tile_rows, width), lambda i: (i, 0))],
            out_specs=pl.BlockSpec((tile_rows, width), lambda i: (i, 0)),
        ),
        compiler_params=pltpu.CompilerParams(
            dimension_semantics=("parallel",),
            vmem_limit_bytes=vmem_limit_bytes,
        ),
        cost_estimate=pl.CostEstimate(
            flops=5 * n_main,
            transcendentals=0,
            bytes_accessed=2 * n_main * itemsize,
        ),
    )(x2d)

    out_main = out2d.reshape(-1)
    if rem:
        # TODO(synk): a masked 1-D ragged-block path would avoid this small
        # join copy; it only triggers when numel % 128 != 0.
        out_flat = jnp.concatenate([out_main, _h_swish_jnp(flat[n_main:])])
    else:
        out_flat = out_main
    return out_flat.reshape(orig_shape)


if __name__ == "__main__":
    key = jax.random.PRNGKey(0)
    x = jax.random.normal(key, (2, 4, 16, 16), dtype=jnp.float32) * 4.0

    out = jax.block_until_ready(h_swish(x))

    ref = _h_swish_jnp(x)
    assert out.shape == x.shape and out.dtype == x.dtype
    assert jnp.allclose(out, ref, atol=1e-5, rtol=1e-6), "mismatch vs reference"

    print("KERNEL_OK")
</pallas_src>

<mosaic_0001>
module attributes {stable_mosaic.version = 11 : i64} {
  func.func @_h_swish_kernel(%arg0: i32, %arg1: memref<1x2048xf32, #tpu.memory_space<vmem>>, %arg2: memref<1x2048xf32, #tpu.memory_space<vmem>>) attributes {dimension_semantics = [#tpu.dimension_semantics<parallel>], iteration_bounds = array<i64: 1>, scalar_prefetch = 0 : i64, scratch_operands = 0 : i64, tpu.core_type = #tpu.core_type<tc>, window_params = [{transform_indices = @transform_0, window_bounds = array<i64: 1, 2048>}, {transform_indices = @transform_1, window_bounds = array<i64: 1, 2048>}]} {
    %c0 = arith.constant 0 : index
    %c0_0 = arith.constant 0 : index
    %0 = vector.load %arg1[%c0, %c0_0] : memref<1x2048xf32, #tpu.memory_space<vmem>>, vector<1x2048xf32>
    %cst = arith.constant 3.000000e+00 : f32
    %1 = vector.broadcast %cst : f32 to vector<1x2048xf32>
    %2 = arith.addf %0, %1 : vector<1x2048xf32>
    %cst_1 = arith.constant 0.000000e+00 : f32
    %cst_2 = arith.constant 6.000000e+00 : f32
    %3 = vector.broadcast %cst_1 : f32 to vector<1x2048xf32>
    %4 = arith.maximumf %3, %2 : vector<1x2048xf32>
    %5 = vector.broadcast %cst_2 : f32 to vector<1x2048xf32>
    %6 = arith.minimumf %5, %4 : vector<1x2048xf32>
    %cst_3 = arith.constant 6.000000e+00 : f32
    %7 = vector.broadcast %cst_3 : f32 to vector<1x2048xf32>
    %8 = arith.divf %6, %7 : vector<1x2048xf32>
    %9 = arith.mulf %8, %0 : vector<1x2048xf32>
    %c0_4 = arith.constant 0 : index
    %c0_5 = arith.constant 0 : index
    %10 = vector.load %arg2[%c0_4, %c0_5] : memref<1x2048xf32, #tpu.memory_space<vmem>>, vector<1x2048xf32>
    tpu.vector_store %arg2[%c0_4, %c0_5], %9 {strides = array<i32>} : memref<1x2048xf32, #tpu.memory_space<vmem>>, vector<1x2048xf32>,
    return
  }
  func.func @transform_0(%arg0: i32) -> (i32, i32) {
    %c0_i32 = arith.constant 0 : i32
    %c0_i32_0 = arith.constant 0 : i32
    return %arg0, %c0_i32 : i32, i32
  }
  func.func @transform_1(%arg0: i32) -> (i32, i32) {
    %c0_i32 = arith.constant 0 : i32
    %c0_i32_0 = arith.constant 0 : i32
    return %arg0, %c0_i32 : i32, i32
  }
}

</mosaic_0001>

<bundles_post_ra>
// kernel: tpu_custom_call.1
= control target key start
LH: loop header
LB: loop body
LE: loop exit
PB: predicated region body
PF: predicated region fallthrough
CT: control target
= control target key end

     0   :  { %6 = vsyncpa [#allocation3], 0  ;;  %s115_s0 = inlined_call_operand.hbm [shape: f32[1,2048], index: 0, kind: input, shape index: {}]   ;;  %s116_s1 = inlined_call_operand.hbm [shape: f32[1,2048], index: 1, kind: output, shape index: {}]  }
   0x1   :  { %7 = vsyncpa [#allocation4], 0  ;;  %s97_s6 = smov [#allocation2]  }
   0x2   :  { %s14_s7 = sshll.u32 %s97_s6, 4  ;;  %s15_s7 = int_to_ptr.vmem [resolvable:$true] %s14_s7 }
   0x3   :  { %s61_s8 = scalar_lea.vmem %s15_s7, 256  ;;  %p66_p1 = scmp.lt.s32.totalorder %s15_s7, %s15_s7 }
   0x4   :  { %p62_p0 = scmp.ne.s32.totalorder %s15_s7, %s61_s8  ;;  %p67_p2 = scmp.lt.s32.totalorder %s61_s8, %s61_s8 }
   0x6   :  { %p68_p3 = por %p67_p2, %p66_p1 }
   0x8   :  { %p69_p4 = pnand %p68_p3, %p62_p0 }
   0xa   :  { %72 = shalt.err (!%p69_p4)
}
   0xb   :  { %17 = dma.hbm_to_vmem [thread:$0]  %s115_s0, 256, %s15_s7, [#allocation3]  }
   0xc   :  { %93 = dma.done.wait [#allocation3], 256  }
   0xd   :  { %94 = vsyncadd [#allocation3], 4294967040  ;;  %v21_v0 = vld [vmem:[#allocation2] sm:$0xff]  ;;  %v22_v1 = vld [vmem:[#allocation2 + $0x8] sm:$0xff]  ;;  %s98_s11 = smov [#allocation5]  }
   0xe   :  { %v23_v2 = vadd.f32 3.0, %v21_v0  ;;  %v24_v3 = vadd.f32 3.0, %v22_v1  ;;  %s42_s12 = sshll.u32 %s98_s11, 4  ;;  %s43_s12 = int_to_ptr.vmem [resolvable:$true] %s42_s12 }
   0xf   :  { %s73_s0 = scalar_lea.vmem %s43_s12, 256  ;;  %p78_p6 = scmp.lt.s32.totalorder %s43_s12, %s43_s12 }
  0x10   :  { %v25_v4 = vmax.f32 %v23_v2, 0.0  ;;  %v26_v5 = vmax.f32 %v24_v3, 0.0  ;;  %p74_p5 = scmp.ne.s32.totalorder %s43_s12, %s73_s0  ;;  %p79_p7 = scmp.lt.s32.totalorder %s73_s0, %s73_s0 }
  0x12   :  { %v27_v6 = vmin.f32 %v25_v4, 6.0  ;;  %v28_v7 = vmin.f32 %v26_v5, 6.0  ;;  %p80_p8 = por %p79_p7, %p78_p6 }
  0x14   :  { %v30_v8 = vmul.f32 0.16666667, %v27_v6  ;;  %v31_v9 = vmul.f32 0.16666667, %v28_v7  ;;  %p81_p9 = pnand %p80_p8, %p74_p5 }
  0x16   :  { %v32_v10 = vmul.f32 %v30_v8, %v21_v0  ;;  %v33_v11 = vmul.f32 %v31_v9, %v22_v1 }
  0x18   :  { %34 = vst [vmem:[#allocation5] sm:$0xff] %v32_v10  ;;  %35 = vst [vmem:[#allocation5 + $0x8] sm:$0xff] %v33_v11 }
  0x19   :  { %84 = shalt.err (!%p81_p9)
}
  0x1a   :  { %45 = dma.vmem_to_hbm [thread:$0]  %s43_s12, 256, %s116_s1, [#allocation4]  }
  0x1b   :  { %95 = dma.done.wait [#allocation4], 256  }
  0x1c   :  { %96 = vsyncadd [#allocation4], 4294967040 }
  0x1d   :  { %49 = vsyncpa [#allocation3], 1 }
  0x1e   :  { %50 = vsyncpa [#allocation4], 1 }

</bundles_post_ra>
